<compile_context>
chip_gen: v5e
topology: v5e:2x2
jax: 0.10.0
libtpu: 0.0.40
codegen_flags: <defaults>
</compile_context>

<pallas_src>
import jax
import jax.numpy as jnp
from jax.experimental import pallas as pl
from jax.experimental.pallas import tpu as pltpu

EPSILON = 1e-05

_LANE_TILE_MAX = 1024                        # full-extent lane dim up to this width
_LANE_TILE_CANDIDATES = (1024, 896, 768, 640, 512)   # multiples of 128, tail-avoiding
_BLOCK_BUDGET_BYTES = 8 << 20                # per-block working set; ~32 MiB pipelined


def _softmax_kernel(x_ref, o_ref):
    # Block shape: (NB, C, T). Softmax is over axis 1 (channels / sublanes);
    # every (batch row, lane column) is independent, so batch/lane tiling is
    # trivially legal and partial tail blocks need no masking.
    x = x_ref[...].astype(jnp.float32)
    exp_x = jnp.exp(x)
    denom = jnp.sum(exp_x, axis=1, keepdims=True) + EPSILON
    # Exact reciprocal: preserves the 1e-5 match with the PyTorch formula.
    inv = pl.reciprocal(denom, approx=False)
    o_ref[...] = (exp_x * inv).astype(o_ref.dtype)


def _sublane_pad(c, itemsize):
    """Channels rounded up to the physical sublane tile for this dtype."""
    tile = 8 * max(1, 4 // int(itemsize))    # f32 -> 8, bf16 -> 16, int8 -> 32
    return ((c + tile - 1) // tile) * tile


def _pick_tiles(n, c, hw, itemsize):
    """Choose (batch_block nb, lane_tile t) under the block budget, avoiding
    narrow tail tiles and guaranteeing at least 2 grid blocks for megacore."""
    c_pad = _sublane_pad(c, itemsize)

    # --- lane tile: full extent if small, else pick the candidate that
    #     minimizes (ideally eliminates) the masked tail tile.
    if hw <= _LANE_TILE_MAX:
        t = hw
    else:
        best = None
        for cand in _LANE_TILE_CANDIDATES:
            rem = hw % cand
            key = (rem != 0, (cand - rem) % cand, -cand)  # prefer no tail, then densest tail, then widest
            if best is None or key < best[0]:
                best = (key, cand)
        t = best[1]

    # --- large-C fix: shrink the lane tile (multiple of 128, min 128) so a
    #     single batch row stays inside the block budget.
    max_t = _BLOCK_BUDGET_BYTES // (c_pad * itemsize)
    if t > max_t:
        if max_t >= 128:
            t = min(t, (max_t // 128) * 128)
        elif hw >= 128:
            t = 128
        # else: hw < 128 -> keep full-extent lane dim (cannot legally shrink).

    # --- fold batch rows into the block up to the budget (amortizes the
    #     ~0.35 us per-step overhead and widens the lane-dense store).
    per_batch_bytes = c_pad * t * itemsize
    nb = max(1, min(n, _BLOCK_BUDGET_BYTES // per_batch_bytes))

    # --- megacore: ensure the grid has >= 2 blocks so v7x's second TC
    #     gets work (costs one extra ~0.35 us step on single-TC chips).
    if pl.cdiv(n, nb) * pl.cdiv(hw, t) == 1:
        if n > 1:
            nb = max(1, (nb + 1) // 2)
        elif hw > 128:
            t = max(128, 128 * (pl.cdiv(hw, 2) // 128))

    return int(nb), int(t), int(c_pad)


def softmax_dim1(x):
    """Softmax over dim=1 (channels) of an NCHW tensor, matching the PyTorch
    module's (non max-subtracted, eps-stabilized) formula."""
    n, c, h, w = x.shape
    hw = h * w
    itemsize = int(jnp.dtype(x.dtype).itemsize)
    x3 = x.reshape(n, c, hw)

    nb, t, c_pad = _pick_tiles(n, c, hw, itemsize)
    grid = (pl.cdiv(n, nb), pl.cdiv(hw, t))

    # Explicit scoped-VMEM budget: ~2 bufs x (in + out) x block, plus slack.
    block_bytes = nb * c_pad * t * itemsize
    vmem_limit = int(min(max(4 * block_bytes + (8 << 20), 32 << 20), 56 << 20))

    out3 = pl.pallas_call(
        _softmax_kernel,
        out_shape=jax.ShapeDtypeStruct((n, c, hw), x.dtype),
        grid_spec=pltpu.PrefetchScalarGridSpec(
            num_scalar_prefetch=0,
            grid=grid,
            in_specs=[pl.BlockSpec((nb, c, t), lambda i, j: (i, 0, j))],
            out_specs=pl.BlockSpec((nb, c, t), lambda i, j: (i, 0, j)),
        ),
        compiler_params=pltpu.CompilerParams(
            dimension_semantics=("parallel", "parallel"),
            vmem_limit_bytes=vmem_limit,
        ),
        cost_estimate=pl.CostEstimate(
            flops=2 * n * c * hw,
            transcendentals=n * c * hw,
            bytes_accessed=2 * n * c * hw * itemsize,
        ),
    )(x3)

    return out3.reshape(n, c, h, w)


if __name__ == "__main__":
    key = jax.random.PRNGKey(0)
    # Small shape consistent with the module's dim=1 (channel) softmax on NCHW.
    x = jax.random.normal(key, (2, 4, 16, 16), dtype=jnp.float32)

    out = softmax_dim1(x)
    out = jax.block_until_ready(out)

    # Pure-JAX reference of the exact PyTorch forward.
    exp_x = jnp.exp(x)
    ref = exp_x / (jnp.sum(exp_x, axis=1, keepdims=True) + EPSILON)

    assert out.shape == x.shape and out.dtype == x.dtype
    assert jnp.allclose(out, ref, atol=1e-5, rtol=1e-5)

    print("KERNEL_OK")
</pallas_src>

<mosaic_0001>
module attributes {stable_mosaic.version = 11 : i64} {
  func.func @_softmax_kernel(%arg0: i32, %arg1: i32, %arg2: memref<1x4x256xf32, #tpu.memory_space<vmem>>, %arg3: memref<1x4x256xf32, #tpu.memory_space<vmem>>) attributes {dimension_semantics = [#tpu.dimension_semantics<parallel>, #tpu.dimension_semantics<parallel>], iteration_bounds = array<i64: 2, 1>, scalar_prefetch = 0 : i64, scratch_operands = 0 : i64, tpu.core_type = #tpu.core_type<tc>, window_params = [{transform_indices = @transform_0, window_bounds = array<i64: 1, 4, 256>}, {transform_indices = @transform_1, window_bounds = array<i64: 1, 4, 256>}]} {
    %c0 = arith.constant 0 : index
    %c0_0 = arith.constant 0 : index
    %c0_1 = arith.constant 0 : index
    %0 = vector.load %arg2[%c0, %c0_0, %c0_1] : memref<1x4x256xf32, #tpu.memory_space<vmem>>, vector<1x4x256xf32>
    %1 = math.exp %0 : vector<1x4x256xf32>
    %cst = arith.constant dense<0.000000e+00> : vector<1x256xf32>
    %2 = vector.multi_reduction <add>, %1, %cst [1] : vector<1x4x256xf32> to vector<1x256xf32>
    %3 = vector.shape_cast %2 : vector<1x256xf32> to vector<1x1x256xf32>
    %cst_2 = arith.constant 9.99999974E-6 : f32
    %4 = vector.broadcast %cst_2 : f32 to vector<1x1x256xf32>
    %5 = arith.addf %3, %4 : vector<1x1x256xf32>
    %6 = tpu.reciprocal %5 : vector<1x1x256xf32> -> vector<1x1x256xf32>
    %7 = vector.broadcast %6 : vector<1x1x256xf32> to vector<1x4x256xf32>
    %8 = arith.mulf %1, %7 : vector<1x4x256xf32>
    %c0_3 = arith.constant 0 : index
    %c0_4 = arith.constant 0 : index
    %c0_5 = arith.constant 0 : index
    %9 = vector.load %arg3[%c0_3, %c0_4, %c0_5] : memref<1x4x256xf32, #tpu.memory_space<vmem>>, vector<1x4x256xf32>
    tpu.vector_store %arg3[%c0_3, %c0_4, %c0_5], %8 {strides = array<i32>} : memref<1x4x256xf32, #tpu.memory_space<vmem>>, vector<1x4x256xf32>,
    return
  }
  func.func @transform_0(%arg0: i32, %arg1: i32) -> (i32, i32, i32) {
    %c0_i32 = arith.constant 0 : i32
    %c0_i32_0 = arith.constant 0 : i32
    return %arg0, %c0_i32, %arg1 : i32, i32, i32
  }
  func.func @transform_1(%arg0: i32, %arg1: i32) -> (i32, i32, i32) {
    %c0_i32 = arith.constant 0 : i32
    %c0_i32_0 = arith.constant 0 : i32
    return %arg0, %c0_i32, %arg1 : i32, i32, i32
  }
}

</mosaic_0001>

<bundles_post_ra>
// kernel: tpu_custom_call.1
= control target key start
LH: loop header
LB: loop body
LE: loop exit
PB: predicated region body
PF: predicated region fallthrough
CT: control target
= control target key end

     0   :  { %6 = vsyncpa [#allocation3], 0  ;;  %s661_s0 = inlined_call_operand.hbm [shape: f32[2,4,256], index: 0, kind: input, shape index: {}]   ;;  %s662_s1 = inlined_call_operand.hbm [shape: f32[2,4,256], index: 1, kind: output, shape index: {}]  }
   0x1   :  { %8 = vsyncpa [#allocation3 + $0x1], 0 }
   0x2   :  { %9 = vsyncpa [#allocation4], 0 }
   0x3   :  { %11 = vsyncpa [#allocation4 + $0x1], 0  ;;  %s528_s6 = smov 0   ;;  %s530_s7 = smov 0  }
   0x4   :  { %s532_s8 = smov 0   ;;  %s534_s9 = smov 0  }
   0x5   :  { %s536_s10 = smov 0   ;;  %s538_s11 = smov 0  }
   0x6 LB: > { %s319_s12 = sadd.s32 4294967295, %s516_s11   ;;  %s320_s13 = sadd.s32 4294967294, %s516_s11   ;;  %s516_s11 = sphi %s538_s11, %s17_s11   ;;  %s512_s10 = sphi %s536_s10, %s673_s10   ;;  %s508_s9 = sphi %s534_s9, %s672_s9   ;;  %s504_s8 = sphi %s532_s8, %s671_s8   ;;  %s500_s7 = sphi %s530_s7, %s670_s7   ;;  %s496_s6 = sphi %s528_s6, %s669_s6  }
   0x7   : > { %s29_s14 = sadd.s32 1, %s512_s10  ;;  %s38_s15 = sadd.s32 1, %s504_s8 }
   0x8   : > { %p31_p0 = scmp.ge.s32.totalorder %s29_s14, 2  ;;  %p45_p1 = scmp.ne.s32.totalorder %s504_s8, %s500_s7 }
   0x9   : > { %p46_p2 = scmp.eq.s32.totalorder %s516_s11, 0  ;;  %p51_p3 = scmp.ne.s32.totalorder %s500_s7, %s496_s6 }
   0xa   : > { %s675_s14 = smov (%p31_p0, %s29_s14), 0  ;;  %p52_p5 = scmp.eq.s32.totalorder %s319_s12, 0 }
   0xb   : > { %p569_p4 = por %p46_p2, %p45_p1  ;;  %s33_s17 = ssub.s32 %s512_s10, %s675_s14 }
   0xc   : > { %p77_p6 = scmp.eq.s32.totalorder %s319_s12, 1  ;;  %p36_p7 = scmp.eq.s32.totalorder %s33_s17, 0 }
   0xd   : > { %p575_p8 = por %p52_p5, %p51_p3  ;;  %p83_p10 = scmp.eq.s32.totalorder %s320_s13, 1 }
   0xe   : > { %p579_p9 = por %p77_p6, %p45_p1  ;;  %p322_p12 = scmp.ge.s32.totalorder %s516_s11, 2 }
   0xf   : > { %s584_s20 = scalar_select %p36_p7, %s504_s8, %s38_s15  }
  0x10   : > { %p586_p11 = por %p83_p10, %p51_p3  ;;  %p348_p13 = scmp.lt.s32.totalorder %s516_s11, 2 }
  0x11   : > { %s103_s22 = sand.u32 1, %s504_s8   ;;  %s334_s24 = sshll.u32 %s512_s10, 3 }
  0x12   : > { %s323_s23 = sshll.u32 %s103_s22, 3  ;;  %s114_s27 = scalar_lea.hbm %s661_s0, %s334_s24 }
  0x13   : > { %s107_s28 = scalar_lea.vmem [#allocation2], %s323_s23  ;;  %s116_s30 = sshll.u32 %s114_s27, 4  ;;  %s117_s30 = int_to_ptr.hbm [resolvable:$true] %s116_s30 }
  0x14   : > { %s118_s29 = sshll.u32 %s107_s28, 4  ;;  %p341_p0 = pnand %p348_p13, %p569_p4  ;;  %s119_s29 = int_to_ptr.vmem [resolvable:$true] %s118_s29 }
  0x15   : > { %p326_p1 = scmp.ge.s32.totalorder %s516_s11, 1  ;;  %p123_p2 = scmp.lt.s32.totalorder %s516_s11, 3 }
  0x16   : > { %s104_s2 = scalar_lea.sflag [#allocation3], %s103_s22 }
  0x17   : > { %343 = dma.hbm_to_vmem [thread:$0]  (!%p341_p0), %s117_s30, 128, %s119_s29, %s104_s2  }
  0x18   : > { %p124_p3 = pnand %p326_p1, %p123_p2 }
  0x19   : > { %s602_s3 = sand.u32 (!%p124_p3), 1, %s500_s7  }
  0x1a   : > { %127 = sbr.rel (%p124_p3) target bundleno = 91 (0x5b), region = 24  ;;  %s327_s4 = sshll.u32 (!%p124_p3), %s602_s3, 3 }
  0x1b   : > { %s130_s5 = scalar_lea.sflag (!%p124_p3), [#allocation3], %s602_s3  ;;  %s133_s12 = scalar_lea.vmem (!%p124_p3), [#allocation2], %s327_s4 }
  0x1f   : > { %487 = dma.done.wait (%p575_p8), %s130_s5, 128  }
  0x20   : > { %489 = vsyncadd (%p575_p8), %s130_s5, 4294967168  ;;  %v155_v0 = vld [vmem:[%s133_s12] sm:$0xff]  ;;  %vm164_vm0 = vcmask 1043456   ;;  %s335_s13 = sshll.u32 %s508_s9, 3  ;;  %s152_s9 = scalar_lea.vmem [#allocation5], %s327_s4 }
  0x21   : > { %v156_v1 = vmul.f32 1.442695, %v155_v0  ;;  %s230_s17 = scalar_lea.hbm %s662_s1, %s335_s13  ;;  %s232_s18 = sshll.u32 %s152_s9, 4  ;;  %s233_s18 = int_to_ptr.vmem [resolvable:$true] %s232_s18 }
  0x22   : > { %s234_s22 = sshll.u32 %s230_s17, 4  ;;  %s217_s23 = scalar_lea.sflag [#allocation4], %s602_s3  ;;  %s235_s22 = int_to_ptr.hbm [resolvable:$true] %s234_s22 }
  0x23   : > { %398 = vpow2.f32 %v156_v1  ;;  %s448_s24 = sshra.s32 %s235_s22, 4  ;;  %s454_s28 = scalar_lea.hbm %s662_s1, 16  ;;  %s449_s24 = int_to_ptr.hbm [resolvable:$true] %s448_s24 }
  0x24   : > { %s450_s25 = scalar_lea.hbm %s449_s24, 8  ;;  %p455_p7 = scmp.lt.s32.totalorder %s449_s24, %s662_s1 }
  0x25   : > { %p451_p4 = scmp.ne.s32.totalorder %s449_s24, %s450_s25  ;;  %p456_p8 = scmp.lt.s32.totalorder %s454_s28, %s450_s25 }
  0x27   : > { %p452_p5 = pnand %p451_p4, %p579_p9  ;;  %p457_p10 = por %p456_p8, %p455_p7 }
  0x29   : > { %v399_v2 = vpop.eup %398  ;;  %p453_p6 = pneg %p452_p5 }
  0x2a   : > { %159 = vst [vmem:[#allocation1] ss:$2 sm:$0xff] %v399_v2 }
  0x2b   : > { %p458_p13 = pnand %p457_p10, %p453_p6 }
  0x31   : > { %v160_v3 = vld.sshfl [vmem:[#allocation1] sm:$0xff pattern:$0x75316420]  ;;  %v161_v4 = vld.sshfl [vmem:[#allocation1 + $0x8] sm:$0xff pattern:$0x75316420] }
  0x32   : > { %v165_v5 = vsel %vm164_vm0, %v160_v3, 0.0  ;;  %v172_v6 = vsel %vm164_vm0, %v161_v4, 0.0 }
  0x33   : > { %v166_v7 = vrot.slane %v165_v5, 4  ;;  %v173_v8 = vrot.slane %v172_v6, 4 }
  0x35   : > { %v167_v9 = vadd.f32 %v166_v7, %v165_v5  ;;  %v174_v10 = vadd.f32 %v173_v8, %v172_v6 }
  0x37   : > { %v168_v11 = vrot.slane %v167_v9, 2  ;;  %v175_v12 = vrot.slane %v174_v10, 2 }
  0x39   : > { %v169_v13 = vadd.f32 %v168_v11, %v167_v9  ;;  %v176_v14 = vadd.f32 %v175_v12, %v174_v10 }
  0x3b   : > { %v170_v15 = vrot.slane %v169_v13, 1  ;;  %v177_v16 = vrot.slane %v176_v14, 1 }
  0x3d   : > { %v171_v17 = vadd.f32 %v170_v15, %v169_v13  ;;  %v178_v18 = vadd.f32 %v177_v16, %v176_v14 }
  0x3f   : > { %v179_v19 = vadd.f32 1e-05, %v171_v17  ;;  %v180_v20 = vadd.f32 1e-05, %v178_v18 }
  0x41   : > { %400 = vrcp.f32 %v179_v19  ;;  %v206_v28 = vand.u32 2147483648, %v180_v20  ;;  %v204_v30 = vand.u32 2147483647, %v180_v20  ;;  %vm186_vm3 = vweird.f32 %v179_v19 }
  0x42   : > { %402 = vrcp.f32 %v180_v20  ;;  %v192_v32 = vand.u32 2147483648, %v179_v19  ;;  %v190_v34 = vand.u32 2147483647, %v179_v19  ;;  %vm200_vm5 = vweird.f32 %v180_v20 }
  0x43   : > { %v207_v36 = vor.u32 1.1754944e-38, %v206_v28  ;;  %vm205_vm7 = vcmp.eq.f32.partialorder %v204_v30, 8.507059e+37 }
  0x44   : > { %v193_v39 = vor.u32 1.1754944e-38, %v192_v32  ;;  %vm191_vm8 = vcmp.eq.f32.partialorder %v190_v34, 8.507059e+37 }
  0x47   : > { %v401_v21 = vpop.eup %400 }
  0x48   : > { %v403_v22 = vpop.eup %402  ;;  %v182_v23 = vmul.f32 %v401_v21, %v179_v19  ;;  %vm187_vm1 = vweird.f32 %v401_v21 }
  0x49   : > { %v196_v24 = vmul.f32 %v403_v22, %v180_v20  ;;  %vm201_vm2 = vweird.f32 %v403_v22  ;;  %vm615_vm4 = vmor %vm186_vm3, %vm187_vm1 }
  0x4a   : > { %v183_v25 = vsub.f32 1.0, %v182_v23  ;;  %vm202_vm6 = vmor %vm200_vm5, %vm201_vm2 }
  0x4b   : > { %v197_v26 = vsub.f32 1.0, %v196_v24 }
  0x4c   : > { %v184_v27 = vmul.f32 %v401_v21, %v183_v25 }
  0x4d   : > { %v198_v29 = vmul.f32 %v403_v22, %v197_v26 }
  0x4e   : > { %v185_v31 = vadd.f32 %v401_v21, %v184_v27 }
  0x4f   : > { %v199_v35 = vadd.f32 %v403_v22, %v198_v29 }
  0x50   : > { %v189_v37 = vsel %vm615_vm4, %v401_v21, %v185_v31 }
  0x51   : > { %v203_v38 = vsel %vm202_vm6, %v403_v22, %v199_v35  ;;  %v194_v42 = vsel %vm191_vm8, %v193_v39, %v189_v37 }
  0x52   : > { %v208_v40 = vsel %vm205_vm7, %v207_v36, %v203_v38 }
  0x53   : > { %v211_v41 = vrot.slane %v208_v40, 4 }
  0x55   : > { %v212_v43 = vsel %vm164_vm0, %v194_v42, %v211_v41 }
  0x56   : > { %v214_v44 = vmul.f32 %v399_v2, %v212_v43 }
  0x58   : > { %215 = vst [vmem:[%s152_s9] sm:$0xff] %v214_v44 }
  0x59   : > { %461 = shalt.err (!%p458_p13)
}
  0x5a   : > { %338 = dma.vmem_to_hbm [thread:$0]  (%p579_p9), %s233_s18, 128, %s235_s22, %s217_s23  }
  0x5b PF: > { %s246_s2 = sand.u32 1, %s496_s6   ;;  %p345_p0 = pnand %p322_p12, %p586_p11 }
  0x5c   : > { %s247_s3 = scalar_lea.sflag [#allocation4], %s246_s2 }
  0x5d   : > { %p346_p1 = pneg %p345_p0 }
  0x5f   : > { %491 = dma.done.wait (%p346_p1), %s247_s3, 128  }
  0x60   : > { %493 = vsyncadd (%p346_p1), %s247_s3, 4294967168  ;;  %s17_s11 = sadd.s32 1, %s516_s11   ;;  %s669_s6 = smov %s500_s7 }
  0x61   : > { %p14_p2 = scmp.ge.s32.totalorder %s17_s11, 4   ;;  %s670_s7 = smov %s504_s8 }
  0x62   : > { %s671_s8 = smov %s584_s20  ;;  %s672_s9 = smov %s512_s10 }
  0x63   : > { %s673_s10 = smov %s675_s14  ;;  %16 = sbr.rel (!%p14_p2) target bundleno = 6 (0x6), region = 69 }
  0x68   :  { %253 = vsyncpa [#allocation3], 1 }
  0x69   :  { %255 = vsyncpa [#allocation3 + $0x1], 1 }
  0x6a   :  { %256 = vsyncpa [#allocation4], 1 }
  0x6b   :  { %258 = vsyncpa [#allocation4 + $0x1], 1 }

</bundles_post_ra>
